<compile_context>
chip_gen: v7x
topology: tpu7x:2x2x1
jax: 0.10.0
libtpu: 0.0.40
codegen_flags: <defaults>
</compile_context>

<pallas_src>
import jax
import jax.numpy as jnp
from jax.experimental import pallas as pl
from jax.experimental.pallas import tpu as pltpu

H1 = 300        # fc1 outputs
H2_PAD = 128    # fc2 outputs padded 100 -> 128 (lane-dense h2, clean fc3 contraction)
OUT_PAD = 128   # fc3 outputs padded 10 -> 128 (lane-dense logits store)


def _round_up(v, m):
    return ((v + m - 1) // m) * m


def lenet300_kernel(x_ref, w1_ref, b1_ref, w2_ref, b2_ref, w3_ref, b3_ref, o_ref):
    # Cast x -> bf16 inside the kernel (VPU, free-ish) instead of a separate HBM convert pass.
    x = x_ref[...].astype(jnp.bfloat16)
    # fc1 + ReLU  (bf16 operands, f32 MXU accumulation, f32 VPU epilogue)
    h1 = jnp.dot(x, w1_ref[...], preferred_element_type=jnp.float32)
    h1 = jnp.maximum(h1 + b1_ref[...], 0.0)
    # fc2 (padded to 128 outputs) + ReLU
    h2 = jnp.dot(h1.astype(jnp.bfloat16), w2_ref[...], preferred_element_type=jnp.float32)
    h2 = jnp.maximum(h2 + b2_ref[...], 0.0)
    # fc3 (padded to 128 outputs; real logits live in [:, :10])
    h3 = jnp.dot(h2.astype(jnp.bfloat16), w3_ref[...], preferred_element_type=jnp.float32)
    o_ref[...] = (h3 + b3_ref[...]).astype(o_ref.dtype)


def lenet300_forward(x, params, *, batch_tile=2048):
    """x: (B, 1, 28, 28) or (B, 784). Returns logits (B, 10) in float32."""
    B = x.shape[0]
    x2d = x.reshape(B, -1)
    assert x2d.shape[1] == 784, f"expected flattened dim 784, got {x2d.shape[1]}"
    if x2d.dtype not in (jnp.float32, jnp.bfloat16):
        x2d = x2d.astype(jnp.float32)
    x_elt = jnp.dtype(x2d.dtype).itemsize

    w1, b1, w2, b2, w3, b3 = params

    # Zero-pad fc2 to 128 outputs and fc3 to 128 outputs -> lane-dense activations / stores.
    w2p = jnp.zeros((H1, H2_PAD), jnp.float32).at[:, :100].set(w2)
    b2p = jnp.zeros((1, H2_PAD), jnp.float32).at[:, :100].set(b2)
    w3p = jnp.zeros((H2_PAD, OUT_PAD), jnp.float32).at[:100, :10].set(w3)
    b3p = jnp.zeros((1, OUT_PAD), jnp.float32).at[:, :10].set(b3)

    # Weights streamed/resident in bf16 (tiny, reused every step); biases stay f32 (epilogue).
    w1s, w2s, w3s = (w.astype(jnp.bfloat16) for w in (w1, w2p, w3p))
    b1f, b2f, b3f = (b.astype(jnp.float32) for b in (b1, b2p, b3p))

    # ---- Batch tile selection ----------------------------------------------------------
    desired = 2048 if batch_tile is None else int(batch_tile)
    desired = max(8, min((desired // 8) * 8, 4096))
    b_round8 = _round_up(B, 8)

    # v7x megacore: for large batches keep >= 4 grid steps so the "parallel" axis shards
    # across both TensorCores (still >= 256 rows per step to amortize ~0.35 us step overhead).
    if b_round8 >= 1024:
        desired = min(desired, max(256, _round_up(pl.cdiv(b_round8, 4), 8)))
    desired = min(desired, b_round8)

    if B % 8 != 0 and B <= desired:
        # Tiny ragged batch: one full-extent tile, no padding needed (block == full array).
        tb, B_pad = B, B
    else:
        # Largest multiple-of-8 tile <= desired that divides round8(B): no padded x copy
        # when B is already a multiple of 8 (common case).
        m = b_round8 // 8
        d = max(desired // 8, 1)
        while m % d != 0:
            d -= 1
        tb, B_pad = d * 8, b_round8

    if B_pad != B:
        # Only hit when B is not a multiple of 8 and larger than one tile: pads <= 7 rows.
        x2d = jnp.pad(x2d, ((0, B_pad - B), (0, 0)))
    grid = (B_pad // tb,)

    # ---- Cost / VMEM bookkeeping ---------------------------------------------------------
    weight_bytes = (784 * H1 + H1 * H2_PAD + H2_PAD * OUT_PAD) * 2 \
        + (H1 + H2_PAD + OUT_PAD) * 4
    flops = 2 * B_pad * (784 * H1 + H1 * H2_PAD + H2_PAD * OUT_PAD)
    bytes_accessed = B_pad * 784 * x_elt + weight_bytes + B_pad * OUT_PAD * 2
    cost = pl.CostEstimate(flops=flops, transcendentals=0, bytes_accessed=bytes_accessed)

    # Per-step VMEM footprint: double-buffered x/out tiles + resident weights (default
    # double buffering) + f32/bf16 activation temporaries (h1 lanes rounded 300 -> 384).
    act_bytes = tb * (784 * 2                 # bf16 copy of x
                      + 384 * (4 + 2)         # h1 f32 + bf16
                      + H2_PAD * (4 + 2)      # h2 f32 + bf16
                      + OUT_PAD * 4)          # h3 f32
    vmem_est = (2 * tb * 784 * x_elt          # x tile, double buffered
                + 2 * tb * OUT_PAD * 2        # bf16 out tile, double buffered
                + 2 * weight_bytes            # weight/bias blocks
                + act_bytes)

    vmem_clamp = 48 * 1024 * 1024             # leave headroom on v7x (64 MiB physical / TC)
    try:
        cap = getattr(pltpu.get_tpu_info(), "vmem_capacity_bytes", None)
        if cap:
            vmem_clamp = min(vmem_clamp, (int(cap) * 3) // 4)
    except Exception:
        pass

    compiler_kwargs = dict(dimension_semantics=("parallel",))
    vmem_req = int(vmem_est * 3 // 2)
    if vmem_req > 16 * 1024 * 1024:           # v5e scoped default is 16 MiB
        compiler_kwargs["vmem_limit_bytes"] = min(vmem_req, vmem_clamp)

    full = lambda shape: pl.BlockSpec(shape, lambda i: (0, 0))

    out_pad = pl.pallas_call(
        lenet300_kernel,
        out_shape=jax.ShapeDtypeStruct((B_pad, OUT_PAD), jnp.bfloat16),
        grid_spec=pltpu.PrefetchScalarGridSpec(
            num_scalar_prefetch=0,
            grid=grid,
            in_specs=[
                pl.BlockSpec((tb, 784), lambda i: (i, 0)),        # x batch tile (streamed f32)
                full((784, H1)), full((1, H1)),                   # fc1 (resident)
                full((H1, H2_PAD)), full((1, H2_PAD)),            # fc2 padded (resident)
                full((H2_PAD, OUT_PAD)), full((1, OUT_PAD)),      # fc3 padded (resident)
            ],
            out_specs=pl.BlockSpec((tb, OUT_PAD), lambda i: (i, 0)),
        ),
        compiler_params=pltpu.CompilerParams(**compiler_kwargs),
        cost_estimate=cost,
    )(x2d, w1s, b1f, w2s, b2f, w3s, b3f)

    # Strip batch padding + 118 zero-padded logit lanes; return f32 like the PyTorch module.
    return out_pad[:B, :10].astype(jnp.float32)


def init_params(key):
    """Deterministic init mirroring nn.Linear default (uniform +- 1/sqrt(fan_in)).
    Weights returned as (in, out) (transposed vs PyTorch); biases as (1, out). All f32."""
    dims = [(784, 300), (300, 100), (100, 10)]
    params = []
    for (fan_in, fan_out) in dims:
        key, kw, kb = jax.random.split(key, 3)
        bound = 1.0 / jnp.sqrt(jnp.float32(fan_in))
        w = jax.random.uniform(kw, (fan_in, fan_out), jnp.float32, -bound, bound)
        b = jax.random.uniform(kb, (1, fan_out), jnp.float32, -bound, bound)
        params += [w, b]
    return tuple(params)


def reference_forward(x, params):
    """Pure-JAX reference with the same bf16-stream / f32-accumulate recipe as the kernel."""
    w1, b1, w2, b2, w3, b3 = params
    h = x.reshape(x.shape[0], -1).astype(jnp.bfloat16)
    h = jnp.dot(h, w1.astype(jnp.bfloat16), preferred_element_type=jnp.float32) + b1
    h = jnp.maximum(h, 0.0)
    h = jnp.dot(h.astype(jnp.bfloat16), w2.astype(jnp.bfloat16),
                preferred_element_type=jnp.float32) + b2
    h = jnp.maximum(h, 0.0)
    return jnp.dot(h.astype(jnp.bfloat16), w3.astype(jnp.bfloat16),
                   preferred_element_type=jnp.float32) + b3


if __name__ == "__main__":
    key = jax.random.PRNGKey(0)
    key, kx1, kx2, kx3 = jax.random.split(key, 4)
    params = init_params(key)

    # Case 1: small MNIST-shaped batch (B, 1, 28, 28); single tile, single grid step.
    B = 8
    x = jax.random.normal(kx1, (B, 1, 28, 28), jnp.float32)
    out = jax.block_until_ready(lenet300_forward(x, params))
    ref = reference_forward(x, params)
    assert out.shape == (B, 10), out.shape
    assert jnp.allclose(out, ref, atol=5e-2, rtol=5e-2), "mismatch vs reference (case 1)"

    # Case 2: batch not divisible by the requested tile -> tile shrinks to a divisor of B
    # (no padded HBM copy of x) and the grid has multiple pipelined steps.
    B2 = 40
    x2 = jax.random.normal(kx2, (B2, 1, 28, 28), jnp.float32)
    out2 = jax.block_until_ready(lenet300_forward(x2, params, batch_tile=16))
    ref2 = reference_forward(x2, params)
    assert out2.shape == (B2, 10), out2.shape
    assert jnp.allclose(out2, ref2, atol=5e-2, rtol=5e-2), "mismatch vs reference (case 2)"

    # Case 3: tiny ragged batch (not a multiple of 8) -> single full-extent tile, no padding.
    B3 = 5
    x3 = jax.random.normal(kx3, (B3, 784), jnp.float32)
    out3 = jax.block_until_ready(lenet300_forward(x3, params))
    ref3 = reference_forward(x3, params)
    assert out3.shape == (B3, 10), out3.shape
    assert jnp.allclose(out3, ref3, atol=5e-2, rtol=5e-2), "mismatch vs reference (case 3)"

    print("KERNEL_OK")
</pallas_src>

<mosaic_0001>
module attributes {stable_mosaic.version = 11 : i64} {
  func.func @lenet300_kernel(%arg0: i32, %arg1: memref<8x784xf32, #tpu.memory_space<vmem>>, %arg2: memref<784x300xbf16, #tpu.memory_space<vmem>>, %arg3: memref<1x300xf32, #tpu.memory_space<vmem>>, %arg4: memref<300x128xbf16, #tpu.memory_space<vmem>>, %arg5: memref<1x128xf32, #tpu.memory_space<vmem>>, %arg6: memref<128x128xbf16, #tpu.memory_space<vmem>>, %arg7: memref<1x128xf32, #tpu.memory_space<vmem>>, %arg8: memref<8x128xbf16, #tpu.memory_space<vmem>>) attributes {dimension_semantics = [#tpu.dimension_semantics<parallel>], iteration_bounds = array<i64: 1>, scalar_prefetch = 0 : i64, scratch_operands = 0 : i64, tpu.core_type = #tpu.core_type<tc>, window_params = [{transform_indices = @transform_0, window_bounds = array<i64: 8, 784>}, {pipeline_mode = #tpu.pipeline_mode<synchronous>, transform_indices = @transform_1, window_bounds = array<i64: 784, 300>}, {pipeline_mode = #tpu.pipeline_mode<synchronous>, transform_indices = @transform_2, window_bounds = array<i64: 1, 300>}, {pipeline_mode = #tpu.pipeline_mode<synchronous>, transform_indices = @transform_3, window_bounds = array<i64: 300, 128>}, {pipeline_mode = #tpu.pipeline_mode<synchronous>, transform_indices = @transform_4, window_bounds = array<i64: 1, 128>}, {pipeline_mode = #tpu.pipeline_mode<synchronous>, transform_indices = @transform_5, window_bounds = array<i64: 128, 128>}, {pipeline_mode = #tpu.pipeline_mode<synchronous>, transform_indices = @transform_6, window_bounds = array<i64: 1, 128>}, {transform_indices = @transform_7, window_bounds = array<i64: 8, 128>}]} {
    %c0 = arith.constant 0 : index
    %c0_0 = arith.constant 0 : index
    %0 = vector.load %arg1[%c0, %c0_0] : memref<8x784xf32, #tpu.memory_space<vmem>>, vector<8x784xf32>
    %1 = arith.truncf %0 : vector<8x784xf32> to vector<8x784xbf16>
    %c0_1 = arith.constant 0 : index
    %c0_2 = arith.constant 0 : index
    %2 = vector.load %arg2[%c0_1, %c0_2] : memref<784x300xbf16, #tpu.memory_space<vmem>>, vector<784x300xbf16>
    %cst = arith.constant dense<0.000000e+00> : vector<8x300xf32>
    %3 = tpu.matmul %1, %2, %cst {dimension_numbers = #tpu.dot_dimension_numbers<[1], [0], [0], [1], [0, 0, 1, 1], [], []>} : vector<8x784xbf16>, vector<784x300xbf16>, vector<8x300xf32> -> vector<8x300xf32>
    %c0_3 = arith.constant 0 : index
    %c0_4 = arith.constant 0 : index
    %4 = vector.load %arg3[%c0_3, %c0_4] : memref<1x300xf32, #tpu.memory_space<vmem>>, vector<1x300xf32>
    %5 = vector.broadcast %4 : vector<1x300xf32> to vector<8x300xf32>
    %6 = arith.addf %3, %5 : vector<8x300xf32>
    %cst_5 = arith.constant 0.000000e+00 : f32
    %7 = vector.broadcast %cst_5 : f32 to vector<8x300xf32>
    %8 = arith.maximumf %6, %7 : vector<8x300xf32>
    %9 = arith.truncf %8 : vector<8x300xf32> to vector<8x300xbf16>
    %c0_6 = arith.constant 0 : index
    %c0_7 = arith.constant 0 : index
    %10 = vector.load %arg4[%c0_6, %c0_7] : memref<300x128xbf16, #tpu.memory_space<vmem>>, vector<300x128xbf16>
    %cst_8 = arith.constant dense<0.000000e+00> : vector<8x128xf32>
    %11 = tpu.matmul %9, %10, %cst_8 {dimension_numbers = #tpu.dot_dimension_numbers<[1], [0], [0], [1], [0, 0, 1, 1], [], []>} : vector<8x300xbf16>, vector<300x128xbf16>, vector<8x128xf32> -> vector<8x128xf32>
    %c0_9 = arith.constant 0 : index
    %c0_10 = arith.constant 0 : index
    %12 = vector.load %arg5[%c0_9, %c0_10] : memref<1x128xf32, #tpu.memory_space<vmem>>, vector<1x128xf32>
    %13 = vector.broadcast %12 : vector<1x128xf32> to vector<8x128xf32>
    %14 = arith.addf %11, %13 : vector<8x128xf32>
    %cst_11 = arith.constant 0.000000e+00 : f32
    %15 = vector.broadcast %cst_11 : f32 to vector<8x128xf32>
    %16 = arith.maximumf %14, %15 : vector<8x128xf32>
    %17 = arith.truncf %16 : vector<8x128xf32> to vector<8x128xbf16>
    %c0_12 = arith.constant 0 : index
    %c0_13 = arith.constant 0 : index
    %18 = vector.load %arg6[%c0_12, %c0_13] : memref<128x128xbf16, #tpu.memory_space<vmem>>, vector<128x128xbf16>
    %cst_14 = arith.constant dense<0.000000e+00> : vector<8x128xf32>
    %19 = tpu.matmul %17, %18, %cst_14 {dimension_numbers = #tpu.dot_dimension_numbers<[1], [0], [0], [1], [0, 0, 1, 1], [], []>} : vector<8x128xbf16>, vector<128x128xbf16>, vector<8x128xf32> -> vector<8x128xf32>
    %c0_15 = arith.constant 0 : index
    %c0_16 = arith.constant 0 : index
    %20 = vector.load %arg7[%c0_15, %c0_16] : memref<1x128xf32, #tpu.memory_space<vmem>>, vector<1x128xf32>
    %21 = vector.broadcast %20 : vector<1x128xf32> to vector<8x128xf32>
    %22 = arith.addf %19, %21 : vector<8x128xf32>
    %23 = arith.truncf %22 : vector<8x128xf32> to vector<8x128xbf16>
    %c0_17 = arith.constant 0 : index
    %c0_18 = arith.constant 0 : index
    %24 = vector.load %arg8[%c0_17, %c0_18] : memref<8x128xbf16, #tpu.memory_space<vmem>>, vector<8x128xbf16>
    tpu.vector_store %arg8[%c0_17, %c0_18], %23 {strides = array<i32>} : memref<8x128xbf16, #tpu.memory_space<vmem>>, vector<8x128xbf16>,
    return
  }
  func.func @transform_0(%arg0: i32) -> (i32, i32) {
    %c0_i32 = arith.constant 0 : i32
    %c0_i32_0 = arith.constant 0 : i32
    return %arg0, %c0_i32 : i32, i32
  }
  func.func @transform_1(%arg0: i32) -> (i32, i32) {
    %c0_i32 = arith.constant 0 : i32
    %c0_i32_0 = arith.constant 0 : i32
    %c0_i32_1 = arith.constant 0 : i32
    return %c0_i32, %c0_i32_0 : i32, i32
  }
  func.func @transform_2(%arg0: i32) -> (i32, i32) {
    %c0_i32 = arith.constant 0 : i32
    %c0_i32_0 = arith.constant 0 : i32
    %c0_i32_1 = arith.constant 0 : i32
    return %c0_i32, %c0_i32_0 : i32, i32
  }
  func.func @transform_3(%arg0: i32) -> (i32, i32) {
    %c0_i32 = arith.constant 0 : i32
    %c0_i32_0 = arith.constant 0 : i32
    %c0_i32_1 = arith.constant 0 : i32
    return %c0_i32, %c0_i32_0 : i32, i32
  }
  func.func @transform_4(%arg0: i32) -> (i32, i32) {
    %c0_i32 = arith.constant 0 : i32
    %c0_i32_0 = arith.constant 0 : i32
    %c0_i32_1 = arith.constant 0 : i32
    return %c0_i32, %c0_i32_0 : i32, i32
  }
  func.func @transform_5(%arg0: i32) -> (i32, i32) {
    %c0_i32 = arith.constant 0 : i32
    %c0_i32_0 = arith.constant 0 : i32
    %c0_i32_1 = arith.constant 0 : i32
    return %c0_i32, %c0_i32_0 : i32, i32
  }
  func.func @transform_6(%arg0: i32) -> (i32, i32) {
    %c0_i32 = arith.constant 0 : i32
    %c0_i32_0 = arith.constant 0 : i32
    %c0_i32_1 = arith.constant 0 : i32
    return %c0_i32, %c0_i32_0 : i32, i32
  }
  func.func @transform_7(%arg0: i32) -> (i32, i32) {
    %c0_i32 = arith.constant 0 : i32
    %c0_i32_0 = arith.constant 0 : i32
    return %arg0, %c0_i32 : i32, i32
  }
}

</mosaic_0001>

<bundles_post_ra>
// kernel: tpu_custom_call.1
= control target key start
LH: loop header
LB: loop body
LE: loop exit
PB: predicated region body
PF: predicated region fallthrough
CT: control target
= control target key end

     0   :  { %v2329_v2 = vmov 0   ;;  %vm1039_vm0 = vcmask 130048   ;;  %vm2331_vm1 = vmmov 0   ;;  %s2969_s0 = inlined_call_operand.vmem [shape: f32[8,784], index: 0, kind: input, shape index: {}]   ;;  %s2970_s1 = inlined_call_operand.vmem [shape: bf16[784,300], index: 1, kind: input, shape index: {}]   ;;  %s2971_s2 = inlined_call_operand.vmem [shape: f32[1,300], index: 2, kind: input, shape index: {}]   ;;  %s2972_s3 = inlined_call_operand.vmem [shape: bf16[300,128], index: 3, kind: input, shape index: {}]   ;;  %s2973_s4 = inlined_call_operand.vmem [shape: f32[1,128], index: 4, kind: input, shape index: {}]   ;;  %s2974_s5 = inlined_call_operand.vmem [shape: bf16[128,128], index: 5, kind: input, shape index: {}]   ;;  %s2975_s6 = inlined_call_operand.vmem [shape: f32[1,128], index: 6, kind: input, shape index: {}]   ;;  %s2976_s7 = inlined_call_operand.hbm [shape: bf16[8,128], index: 7, kind: output, shape index: {}]  }
   0x1   :  { %v2082_v0 = vld [vmem:[%s2970_s1 + $0x4] ss:$12 sps:$4 sm:$0xff]   ;;  %v2084_v1 = vld [vmem:[%s2970_s1] ss:$12 sps:$4 sm:$0xff]   ;;  %1198 = vmatprep.mubr.bf16.mxu1 %v2329_v2  ;;  %v2085_v3 = vld [vmem:[%s2970_s1 + $0x1c] ss:$12 sps:$4 sm:$0xff]  }
   0x2   :  { %1043 = vmatprep.subr.bf16.mxu0 %v2082_v0  ;;  %v2087_v4 = vld [vmem:[%s2970_s1 + $0x18] ss:$12 sps:$4 sm:$0xff]   ;;  %v2088_v5 = vld [vmem:[%s2970_s1 + $0x34] ss:$12 sps:$4 sm:$0xff]   ;;  %v2090_v6 = vld [vmem:[%s2970_s1 + $0x30] ss:$12 sps:$4 sm:$0xff]  }
   0x3   :  { %1044 = vmatpush1.bf16.msra.mxu0 %v2084_v1  ;;  %v2091_v7 = vld [vmem:[%s2970_s1 + $0x4c] ss:$12 sps:$4 sm:$0xff]   ;;  %v2093_v8 = vld [vmem:[%s2970_s1 + $0x48] ss:$12 sps:$4 sm:$0xff]   ;;  %v2094_v9 = vld [vmem:[%s2970_s1 + $0x64] ss:$12 sps:$4 sm:$0xff]  }
   0x4   :  { %1045 = vmatprep.subr.bf16.mxu0 %v2085_v3  ;;  %v2109_v10 = vld [vmem:[%s2970_s1 + $0x484] ss:$12 sps:$4 sm:$0xff]   ;;  %v2096_v11 = vld [vmem:[%s2970_s1 + $0x60] ss:$12 sps:$4 sm:$0xff]   ;;  %v2115_v13 = vld [vmem:[%s2970_s1 + $0xc8] ss:$12 sps:$4 sm:$0xff]  }
   0x5   :  { %1166 = vmatprep.subr.bf16.mxu1 %v2109_v10  ;;  %v2113_v12 = vld [vmem:[%s2970_s1 + $0x480] ss:$12 sps:$4 sm:$0xff]   ;;  %v2097_v14 = vld [vmem:[%s2970_s1 + $0x7c] ss:$12 sps:$4 sm:$0xff]   ;;  %v34_v15 = vld [vmem:[%s2969_s0 + $0x30] sm:$0xff] }
   0x6   :  { %1167 = vmatpush1.bf16.msra.mxu1 %v2113_v12  ;;  %v2418_v16 = vpack.c.bf16 %v34_v15, %v34_v15  ;;  %v2118_v17 = vld [vmem:[%s2970_s1 + $0x8] ss:$12 sps:$4 sm:$0xff]   ;;  %v2099_v18 = vld [vmem:[%s2970_s1 + $0x78] ss:$12 sps:$4 sm:$0xff]   ;;  %v2120_v19 = vld [vmem:[%s2970_s1 + $0xe0] ss:$12 sps:$4 sm:$0xff]  }
   0x7   :  { %1046 = vmatpush1.bf16.msra.mxu0 %v2087_v4  ;;  %1927 = vmatprep.subr.bf16.mxu1 %v2115_v13  ;;  %v2100_v20 = vld [vmem:[%s2970_s1 + $0x94] ss:$12 sps:$4 sm:$0xff]   ;;  %v2125_v22 = vld [vmem:[%s2970_s1 + $0xf8] ss:$12 sps:$4 sm:$0xff]   ;;  %v2102_v23 = vld [vmem:[%s2970_s1 + $0x90] ss:$12 sps:$4 sm:$0xff]  }
   0x8   :  { %1047 = vmatprep.subr.bf16.mxu0 %v2088_v5  ;;  %v2123_v21 = vld [vmem:[%s2970_s1 + $0x20] ss:$12 sps:$4 sm:$0xff]   ;;  %v2128_v25 = vld [vmem:[%s2970_s1 + $0x38] ss:$12 sps:$4 sm:$0xff]   ;;  %v2130_v26 = vld [vmem:[%s2970_s1 + $0x110] ss:$12 sps:$4 sm:$0xff]  }
   0x9   :  { %1895 = vmatmul.mubr.msk.bf16.vlgmr.msra.gmra.mrb[0].mxu1 %vm1039_vm0, %v2418_v16  ;;  %v2103_v24 = vld [vmem:[%s2970_s1 + $0xac] ss:$12 sps:$4 sm:$0xff]   ;;  %v2105_v27 = vld [vmem:[%s2970_s1 + $0xa8] ss:$12 sps:$4 sm:$0xff]   ;;  %v2106_v28 = vld [vmem:[%s2970_s1 + $0xc4] ss:$12 sps:$4 sm:$0xff]  }
   0xa   :  { %1928 = vmatpush3.bf16.msra.mxu1 %v2118_v17  ;;  %v2133_v29 = vld [vmem:[%s2970_s1 + $0x50] ss:$12 sps:$4 sm:$0xff]   ;;  %v2135_v30 = vld [vmem:[%s2970_s1 + $0x128] ss:$12 sps:$4 sm:$0xff]   ;;  %v2108_v31 = vld [vmem:[%s2970_s1 + $0xc0] ss:$12 sps:$4 sm:$0xff]  }
   0xb   :  { %1048 = vmatpush1.bf16.msra.mxu0 %v2090_v6  ;;  %1929 = vmatprep.subr.bf16.mxu1 %v2120_v19  ;;  %v2111_v32 = vld [vmem:[%s2970_s1 + $0xdc] ss:$12 sps:$4 sm:$0xff]   ;;  %v2140_v34 = vld [vmem:[%s2970_s1 + $0x140] ss:$12 sps:$4 sm:$0xff]   ;;  %v2114_v35 = vld [vmem:[%s2970_s1 + $0xd8] ss:$12 sps:$4 sm:$0xff]  }
   0xc   :  { %1049 = vmatprep.subr.bf16.mxu0 %v2091_v7  ;;  %v2138_v33 = vld [vmem:[%s2970_s1 + $0x68] ss:$12 sps:$4 sm:$0xff]   ;;  %v2143_v37 = vld [vmem:[%s2970_s1 + $0x80] ss:$12 sps:$4 sm:$0xff]   ;;  %v2145_v39 = vld [vmem:[%s2970_s1 + $0x158] ss:$12 sps:$4 sm:$0xff]  }
   0xd   :  { %v2116_v36 = vld [vmem:[%s2970_s1 + $0xf4] ss:$12 sps:$4 sm:$0xff]   ;;  %v29_v38 = vld [vmem:[%s2969_s0 + $0x8] sm:$0xff]  ;;  %v2119_v41 = vld [vmem:[%s2970_s1 + $0xf0] ss:$12 sps:$4 sm:$0xff]  }
   0xe   :  { %1930 = vmatpush3.bf16.msra.mxu1 %v2123_v21  ;;  %v36_v40 = vpack.c.bf16 %v29_v38, %v29_v38  ;;  %v2121_v42 = vld [vmem:[%s2970_s1 + $0x10c] ss:$12 sps:$4 sm:$0xff]   ;;  %v2150_v44 = vld [vmem:[%s2970_s1 + $0x170] ss:$12 sps:$4 sm:$0xff]   ;;  %v2124_v45 = vld [vmem:[%s2970_s1 + $0x108] ss:$12 sps:$4 sm:$0xff]  }
   0xf   :  { %1050 = vmatpush1.bf16.msra.mxu0 %v2093_v8  ;;  %1931 = vmatprep.subr.bf16.mxu1 %v2125_v22  ;;  %v2149_v43 = vld [vmem:[%s2970_s1 + $0x98] ss:$12 sps:$4 sm:$0xff]   ;;  %v2154_v47 = vld [vmem:[%s2970_s1 + $0xb0] ss:$12 sps:$4 sm:$0xff]   ;;  %v2155_v48 = vld [vmem:[%s2970_s1 + $0x248] ss:$12 sps:$4 sm:$0xff]  }
  0x10   :  { %1051 = vmatprep.subr.bf16.mxu0 %v2094_v9  ;;  %1075 = vmatprep.mubr.bf16.mxu0 %v36_v40  ;;  %v2126_v46 = vld [vmem:[%s2970_s1 + $0x124] ss:$12 sps:$4 sm:$0xff]   ;;  %v2129_v50 = vld [vmem:[%s2970_s1 + $0x120] ss:$12 sps:$4 sm:$0xff]   ;;  %v2131_v51 = vld [vmem:[%s2970_s1 + $0x13c] ss:$12 sps:$4 sm:$0xff]  }
  0x11   :  { %1239 = vmatprep.mubr.bf16.mxu1 %v36_v40  ;;  %v28_v49 = vld [vmem:[%s2969_s0] sm:$0xff]  ;;  %v2159_v52 = vld [vmem:[%s2970_s1 + $0x188] ss:$12 sps:$4 sm:$0xff]   ;;  %v2139_v59 = vld [vmem:[%s2970_s1 + $0x150] ss:$12 sps:$4 sm:$0xff]  }
  0x12   :  { %1932 = vmatpush3.bf16.msra.mxu1 %v2128_v25  ;;  %v35_v53 = vpack.c.bf16 %v28_v49, %v28_v49  ;;  %v2160_v54 = vld [vmem:[%s2970_s1 + $0x260] ss:$12 sps:$4 sm:$0xff]   ;;  %v2134_v55 = vld [vmem:[%s2970_s1 + $0x138] ss:$12 sps:$4 sm:$0xff]   ;;  %v2170_v62 = vld [vmem:[%s2970_s1 + $0x290] ss:$12 sps:$4 sm:$0xff]  }
  0x13   :  { %1052 = vmatpush1.bf16.msra.mxu0 %v2096_v11  ;;  %1933 = vmatprep.subr.bf16.mxu1 %v2130_v26  ;;  %v2136_v56 = vld [vmem:[%s2970_s1 + $0x154] ss:$12 sps:$4 sm:$0xff]   ;;  %v2165_v58 = vld [vmem:[%s2970_s1 + $0x278] ss:$12 sps:$4 sm:$0xff]   ;;  %v2174_v1 = vld [vmem:[%s2970_s1 + $0x1d0] ss:$12 sps:$4 sm:$0xff]  }
  0x14   :  { %1053 = vmatprep.subr.bf16.mxu0 %v2097_v14  ;;  %v2164_v57 = vld [vmem:[%s2970_s1 + $0x1a0] ss:$12 sps:$4 sm:$0xff]   ;;  %v2169_v61 = vld [vmem:[%s2970_s1 + $0x1b8] ss:$12 sps:$4 sm:$0xff]   ;;  %v2144_v63 = vld [vmem:[%s2970_s1 + $0x168] ss:$12 sps:$4 sm:$0xff]  }
  0x15   :  { %v2141_v60 = vld [vmem:[%s2970_s1 + $0x16c] ss:$12 sps:$4 sm:$0xff]   ;;  %v2148_v0 = vld [vmem:[%s2970_s1 + $0x184] ss:$12 sps:$4 sm:$0xff]   ;;  %v2175_v2 = vld [vmem:[%s2970_s1 + $0x2a8] ss:$12 sps:$4 sm:$0xff]  }
  0x16   :  { %1934 = vmatpush3.bf16.msra.mxu1 %v2133_v29  ;;  %v2146_v3 = vld [vmem:[%s2970_s1 + $0x180] ss:$12 sps:$4 sm:$0xff]   ;;  %v2153_v4 = vld [vmem:[%s2970_s1 + $0x19c] ss:$12 sps:$4 sm:$0xff]   ;;  %v2151_v7 = vld [vmem:[%s2970_s1 + $0x198] ss:$12 sps:$4 sm:$0xff]  }
  0x17   :  { %1054 = vmatpush1.bf16.msra.mxu0 %v2099_v18  ;;  %1935 = vmatprep.subr.bf16.mxu1 %v2135_v30  ;;  %v2179_v5 = vld [vmem:[%s2970_s1 + $0x1e8] ss:$12 sps:$4 sm:$0xff]   ;;  %v2180_v6 = vld [vmem:[%s2970_s1 + $0x2c0] ss:$12 sps:$4 sm:$0xff]   ;;  %v2185_v10 = vld [vmem:[%s2970_s1 + $0x2d8] ss:$12 sps:$4 sm:$0xff]  }
  0x18   :  { %1055 = vmatprep.subr.bf16.mxu0 %v2100_v20  ;;  %v2158_v8 = vld [vmem:[%s2970_s1 + $0x1b4] ss:$12 sps:$4 sm:$0xff]   ;;  %v31_v11 = vld [vmem:[%s2969_s0 + $0x18] sm:$0xff]  ;;  %v2168_v19 = vld [vmem:[%s2970_s1 + $0x1e4] ss:$12 sps:$4 sm:$0xff]  }
  0x19   :  { %v2184_v9 = vld [vmem:[%s2970_s1 + $0x200] ss:$12 sps:$4 sm:$0xff]   ;;  %v38_v12 = vpack.c.bf16 %v31_v11, %v31_v11  ;;  %v2156_v13 = vld [vmem:[%s2970_s1 + $0x1b0] ss:$12 sps:$4 sm:$0xff]   ;;  %v2189_v15 = vld [vmem:[%s2970_s1 + $0x218] ss:$12 sps:$4 sm:$0xff]  }
  0x1a   :  { %1936 = vmatpush3.bf16.msra.mxu1 %v2138_v33  ;;  %v2163_v14 = vld [vmem:[%s2970_s1 + $0x1cc] ss:$12 sps:$4 sm:$0xff]   ;;  %v2161_v17 = vld [vmem:[%s2970_s1 + $0x1c8] ss:$12 sps:$4 sm:$0xff]   ;;  %v2190_v18 = vld [vmem:[%s2970_s1 + $0x2f0] ss:$12 sps:$4 sm:$0xff]  }
  0x1b   :  { %1056 = vmatpush1.bf16.msra.mxu0 %v2102_v23  ;;  %1937 = vmatprep.subr.bf16.mxu1 %v2140_v34  ;;  %v2194_v20 = vld [vmem:[%s2970_s1 + $0x230] ss:$12 sps:$4 sm:$0xff]   ;;  %v2195_v22 = vld [vmem:[%s2970_s1 + $0x3c8] ss:$12 sps:$4 sm:$0xff]   ;;  %v2166_v23 = vld [vmem:[%s2970_s1 + $0x1e0] ss:$12 sps:$4 sm:$0xff]  }
  0x1c   :  { %1057 = vmatprep.subr.bf16.mxu0 %v2103_v24  ;;  %v30_v21 = vld [vmem:[%s2969_s0 + $0x10] sm:$0xff]  ;;  %v2173_v24 = vld [vmem:[%s2970_s1 + $0x1fc] ss:$12 sps:$4 sm:$0xff]   ;;  %v2204_v30 = vld [vmem:[%s2970_s1 + $0x320] ss:$12 sps:$4 sm:$0xff]  }
  0x1d   :  { %v2626_v25 = vpack.c.bf16 %v30_v21, %v30_v21  ;;  %v2199_v26 = vld [vmem:[%s2970_s1 + $0x308] ss:$12 sps:$4 sm:$0xff]   ;;  %v2183_v33 = vld [vmem:[%s2970_s1 + $0x22c] ss:$12 sps:$4 sm:$0xff]   ;;  %v2214_v38 = vld [vmem:[%s2970_s1 + $0x350] ss:$12 sps:$4 sm:$0xff]  }
  0x1e   :  { %1938 = vmatpush3.bf16.msra.mxu1 %v2143_v37  ;;  %v2178_v29 = vld [vmem:[%s2970_s1 + $0x214] ss:$12 sps:$4 sm:$0xff]   ;;  %v2209_v34 = vld [vmem:[%s2970_s1 + $0x338] ss:$12 sps:$4 sm:$0xff]  }
  0x1f   :  { %1058 = vmatpush1.bf16.msra.mxu0 %v2105_v27  ;;  %1939 = vmatprep.subr.bf16.mxu1 %v2145_v39  ;;  %v2200_v27 = vld [vmem:[%s2970_s1 + $0x3e0] ss:$12 sps:$4 sm:$0xff]   ;;  %v2188_v37 = vld [vmem:[%s2970_s1 + $0x244] ss:$12 sps:$4 sm:$0xff]   ;;  %v2215_v39 = vld [vmem:[%s2970_s1 + $0x428] ss:$12 sps:$4 sm:$0xff]  }
  0x20   :  { %1059 = vmatprep.subr.bf16.mxu0 %v2106_v28  ;;  %v2171_v28 = vld [vmem:[%s2970_s1 + $0x1f8] ss:$12 sps:$4 sm:$0xff]   ;;  %v2186_v40 = vld [vmem:[%s2970_s1 + $0x240] ss:$12 sps:$4 sm:$0xff]  }
  0x21   :  { %v2225_v49 = vld [vmem:[%s2970_s1 + $0x458] ss:$12 sps:$4 sm:$0xff]  }
  0x22   :  { %1940 = vmatpush3.bf16.msra.mxu1 %v2149_v43  ;;  %v33_v43 = vld [vmem:[%s2969_s0 + $0x28] sm:$0xff] }
  0x23   :  { %1060 = vmatpush1.bf16.msra.mxu0 %v2108_v31  ;;  %1941 = vmatprep.subr.bf16.mxu1 %v2150_v44  ;;  %v2205_v31 = vld [vmem:[%s2970_s1 + $0x3f8] ss:$12 sps:$4 sm:$0xff]   ;;  %v2220_v44 = vld [vmem:[%s2970_s1 + $0x440] ss:$12 sps:$4 sm:$0xff]  }
  0x24   :  { %1061 = vmatprep.subr.bf16.mxu0 %v2111_v32  ;;  %v2176_v32 = vld [vmem:[%s2970_s1 + $0x210] ss:$12 sps:$4 sm:$0xff]  }
  0x26   :  { %1942 = vmatpush3.bf16.msra.mxu1 %v2154_v47  ;;  %v2198_v47 = vld [vmem:[%s2970_s1 + $0x274] ss:$12 sps:$4 sm:$0xff]  }
  0x27   :  { %1062 = vmatpush1.bf16.msra.mxu0 %v2114_v35  ;;  %1949 = vmatprep.subr.bf16.mxu1 %v2155_v48  ;;  %v2210_v35 = vld [vmem:[%s2970_s1 + $0x410] ss:$12 sps:$4 sm:$0xff]   ;;  %v2224_v48 = vld [vmem:[%s2970_s1 + $0x380] ss:$12 sps:$4 sm:$0xff]  }
  0x28   :  { %1063 = vmatprep.subr.bf16.mxu0 %v2116_v36  ;;  %v2181_v36 = vld [vmem:[%s2970_s1 + $0x228] ss:$12 sps:$4 sm:$0xff]  }
  0x29   :  { %1240 = vmatmul.mubr.bf16.vlgmr.msra.gmra.mrb[4].mxu1 %v35_v53 }
  0x2a   :  { %1950 = vmatpush3.bf16.msra.mxu1 %v2159_v52  ;;  %1279 = vmatprep.mubr.bf16.mxu1 %v38_v12  ;;  %v2229_v52 = vld [vmem:[%s2970_s1 + $0x398] ss:$12 sps:$4 sm:$0xff]  }
  0x2b   :  { %1064 = vmatpush1.bf16.msra.mxu0 %v2119_v41  ;;  %1951 = vmatprep.subr.bf16.mxu1 %v2160_v54  ;;  %v2193_v41 = vld [vmem:[%s2970_s1 + $0x25c] ss:$12 sps:$4 sm:$0xff]  }
  0x2c   :  { %1065 = vmatprep.subr.bf16.mxu0 %v2121_v42  ;;  %v2219_v42 = vld [vmem:[%s2970_s1 + $0x368] ss:$12 sps:$4 sm:$0xff]  }
  0x2d   :  { %v2201_v54 = vld [vmem:[%s2970_s1 + $0x288] ss:$12 sps:$4 sm:$0xff]  }
  0x2e   :  { %1952 = vmatpush3.bf16.msra.mxu1 %v2164_v57  ;;  %v32_v57 = vld [vmem:[%s2969_s0 + $0x20] sm:$0xff] }
  0x2f   :  { %1066 = vmatpush1.bf16.msra.mxu0 %v2124_v45  ;;  %1953 = vmatprep.subr.bf16.mxu1 %v2165_v58  ;;  %v40_v45 = vpack.c.bf16 %v33_v43, %v33_v43  ;;  %v2206_v58 = vld [vmem:[%s2970_s1 + $0x2a0] ss:$12 sps:$4 sm:$0xff]  }
  0x30   :  { %1067 = vmatprep.subr.bf16.mxu0 %v2126_v46  ;;  %v2191_v46 = vld [vmem:[%s2970_s1 + $0x258] ss:$12 sps:$4 sm:$0xff]  }
  0x32   :  { %1954 = vmatpush3.bf16.msra.mxu1 %v2169_v61  ;;  %v2241_v61 = vld [vmem:[%s2970_s1 + $0x488] ss:$12 sps:$4 sm:$0xff]  }
  0x33   :  { %1068 = vmatpush1.bf16.msra.mxu0 %v2129_v50  ;;  %1955 = vmatprep.subr.bf16.mxu1 %v2170_v62  ;;  %v2196_v50 = vld [vmem:[%s2970_s1 + $0x270] ss:$12 sps:$4 sm:$0xff]   ;;  %v2330_v62 = vmov 0.0  }
  0x34   :  { %1069 = vmatprep.subr.bf16.mxu0 %v2131_v51  ;;  %v2203_v51 = vld [vmem:[%s2970_s1 + $0x28c] ss:$12 sps:$4 sm:$0xff]  }
  0x36   :  { %1956 = vmatpush3.bf16.msra.mxu1 %v2174_v1  ;;  %v2216_v1 = vld [vmem:[%s2970_s1 + $0x2d0] ss:$12 sps:$4 sm:$0xff]  }
  0x37   :  { %1070 = vmatpush1.bf16.msra.mxu0 %v2134_v55  ;;  %1957 = vmatprep.subr.bf16.mxu1 %v2175_v2  ;;  %v2208_v55 = vld [vmem:[%s2970_s1 + $0x2a4] ss:$12 sps:$4 sm:$0xff]   ;;  %v2223_v2 = vld [vmem:[%s2970_s1 + $0x2ec] ss:$12 sps:$4 sm:$0xff]  }
  0x38   :  { %1071 = vmatprep.subr.bf16.mxu0 %v2136_v56  ;;  %v2234_v56 = vld [vmem:[%s2970_s1 + $0x3b0] ss:$12 sps:$4 sm:$0xff]  }
  0x3a   :  { %1958 = vmatpush3.bf16.msra.mxu1 %v2179_v5  ;;  %v2226_v5 = vld [vmem:[%s2970_s1 + $0x300] ss:$12 sps:$4 sm:$0xff]  }
  0x3b   :  { %1072 = vmatpush1.bf16.msra.mxu0 %v2139_v59  ;;  %1959 = vmatprep.subr.bf16.mxu1 %v2180_v6  ;;  %v2725_v59 = vpack.c.bf16 %v32_v57, %v32_v57  ;;  %v2233_v6 = vld [vmem:[%s2970_s1 + $0x31c] ss:$12 sps:$4 sm:$0xff]  }
  0x3c   :  { %1073 = vmatprep.subr.bf16.mxu0 %v2141_v60  ;;  %v2213_v60 = vld [vmem:[%s2970_s1 + $0x2bc] ss:$12 sps:$4 sm:$0xff]  }
  0x3e   :  { %1960 = vmatpush3.bf16.msra.mxu1 %v2184_v9 }
  0x3f   :  { %1074 = vmatpush1.bf16.msra.mxu0 %v2144_v63  ;;  %1961 = vmatprep.subr.bf16.mxu1 %v2185_v10  ;;  %v2211_v63 = vld [vmem:[%s2970_s1 + $0x2b8] ss:$12 sps:$4 sm:$0xff]  }
  0x40   :  { %1084 = vmatprep.subr.bf16.mxu0 %v2148_v0  ;;  %v2218_v0 = vld [vmem:[%s2970_s1 + $0x2d4] ss:$12 sps:$4 sm:$0xff]  }
  0x42   :  { %1076 = vmatmul.mubr.bf16.vlgmr.msra.gmra.mrb[0].mxu0 %v35_v53  ;;  %1962 = vmatpush3.bf16.msra.mxu1 %v2189_v15  ;;  %v2230_v53 = vld [vmem:[%s2970_s1 + $0x470] ss:$12 sps:$4 sm:$0xff]  }
  0x43   :  { %1085 = vmatpush1.bf16.msra.mxu0 %v2146_v3  ;;  %1116 = vmatprep.mubr.bf16.mxu0 %v38_v12  ;;  %v2221_v3 = vld [vmem:[%s2970_s1 + $0x2e8] ss:$12 sps:$4 sm:$0xff]  }
  0x44   :  { %1086 = vmatprep.subr.bf16.mxu0 %v2153_v4  ;;  %1963 = vmatprep.subr.bf16.mxu1 %v2190_v18  ;;  %v2228_v4 = vld [vmem:[%s2970_s1 + $0x304] ss:$12 sps:$4 sm:$0xff]  }
  0x46   :  { %1964 = vmatpush3.bf16.msra.mxu1 %v2194_v20 }
  0x47   :  { %1087 = vmatpush1.bf16.msra.mxu0 %v2151_v7  ;;  %1971 = vmatprep.subr.bf16.mxu1 %v2195_v22  ;;  %v2231_v7 = vld [vmem:[%s2970_s1 + $0x318] ss:$12 sps:$4 sm:$0xff]  }
  0x48   :  { %1088 = vmatprep.subr.bf16.mxu0 %v2158_v8  ;;  %v2235_v8 = vld [vmem:[%s2970_s1 + $0x330] ss:$12 sps:$4 sm:$0xff]  }
  0x49   :  { %1280 = vmatmul.mubr.bf16.vlgmr.msra.gmra.mrb[8].mxu1 %v2626_v25 }
  0x4a   :  { %1972 = vmatpush3.bf16.msra.mxu1 %v2199_v26  ;;  %1319 = vmatprep.mubr.bf16.mxu1 %v40_v45 }
  0x4b   :  { %1089 = vmatpush1.bf16.msra.mxu0 %v2156_v13  ;;  %1973 = vmatprep.subr.bf16.mxu1 %v2200_v27 }
  0x4c   :  { %1090 = vmatprep.subr.bf16.mxu0 %v2163_v14 }
  0x4e   :  { %1974 = vmatpush3.bf16.msra.mxu1 %v2204_v30 }
  0x4f   :  { %1091 = vmatpush1.bf16.msra.mxu0 %v2161_v17  ;;  %1975 = vmatprep.subr.bf16.mxu1 %v2205_v31 }
  0x50   :  { %1092 = vmatprep.subr.bf16.mxu0 %v2168_v19 }
  0x52   :  { %1976 = vmatpush3.bf16.msra.mxu1 %v2209_v34 }
  0x53   :  { %1093 = vmatpush1.bf16.msra.mxu0 %v2166_v23  ;;  %1977 = vmatprep.subr.bf16.mxu1 %v2210_v35 }
  0x54   :  { %1094 = vmatprep.subr.bf16.mxu0 %v2173_v24 }
  0x56   :  { %1978 = vmatpush3.bf16.msra.mxu1 %v2214_v38 }
  0x57   :  { %1095 = vmatpush1.bf16.msra.mxu0 %v2171_v28  ;;  %1979 = vmatprep.subr.bf16.mxu1 %v2215_v39 }
  0x58   :  { %1096 = vmatprep.subr.bf16.mxu0 %v2178_v29 }
  0x5a   :  { %1980 = vmatpush3.bf16.msra.mxu1 %v2219_v42 }
  0x5b   :  { %1097 = vmatpush1.bf16.msra.mxu0 %v2176_v32  ;;  %1981 = vmatprep.subr.bf16.mxu1 %v2220_v44 }
  0x5c   :  { %1098 = vmatprep.subr.bf16.mxu0 %v2183_v33 }
  0x5e   :  { %1982 = vmatpush3.bf16.msra.mxu1 %v2224_v48 }
  0x5f   :  { %1099 = vmatpush1.bf16.msra.mxu0 %v2181_v36  ;;  %1983 = vmatprep.subr.bf16.mxu1 %v2225_v49 }
  0x60   :  { %1100 = vmatprep.subr.bf16.mxu0 %v2188_v37 }
  0x62   :  { %1984 = vmatpush3.bf16.msra.mxu1 %v2229_v52 }
  0x63   :  { %1101 = vmatpush1.bf16.msra.mxu0 %v2186_v40  ;;  %1985 = vmatprep.subr.bf16.mxu1 %v2230_v53 }
  0x64   :  { %1102 = vmatprep.subr.bf16.mxu0 %v2193_v41 }
  0x66   :  { %1986 = vmatpush3.bf16.msra.mxu1 %v2234_v56 }
  0x67   :  { %1103 = vmatpush1.bf16.msra.mxu0 %v2191_v46  ;;  %2030 = vmatprep.subr.bf16.mxu1 %v2330_v62 }
  0x68   :  { %1104 = vmatprep.subr.bf16.mxu0 %v2198_v47 }
  0x69   :  { %1320 = vmatmul.mubr.bf16.vlgmr.msra.gmra.mrb[12].mxu1 %v2725_v59 }
  0x6a   :  { %2031 = vmatpush3.bf16.msra.mxu1 %v2241_v61  ;;  %2032 = vmatprep.mubr.msk.bf16.mxu1 %vm2331_vm1, %v2330_v62 }
  0x6b   :  { %1105 = vmatpush1.bf16.msra.mxu0 %v2196_v50 }
  0x6c   :  { %1106 = vmatprep.subr.bf16.mxu0 %v2203_v51 }
  0x6f   :  { %1107 = vmatpush1.bf16.msra.mxu0 %v2201_v54 }
  0x70   :  { %1108 = vmatprep.subr.bf16.mxu0 %v2208_v55 }
  0x71   :  { %2033 = vmatmul.mubr.msk.bf16.vlgmr.msra.gmra.mrb[16].mxu1 %vm1039_vm0, %v2418_v16  ;;  %v2237_v16 = vld [vmem:[%s2970_s1 + $0x334] ss:$12 sps:$4 sm:$0xff]  }
  0x73   :  { %1109 = vmatpush1.bf16.msra.mxu0 %v2206_v58 }
  0x74   :  { %1110 = vmatprep.subr.bf16.mxu0 %v2213_v60 }
  0x77   :  { %1111 = vmatpush1.bf16.msra.mxu0 %v2211_v63 }
  0x78   :  { %1112 = vmatprep.subr.bf16.mxu0 %v2218_v0 }
  0x7b   :  { %1113 = vmatpush1.bf16.msra.mxu0 %v2216_v1 }
  0x7c   :  { %1114 = vmatprep.subr.bf16.mxu0 %v2223_v2 }
  0x7f   :  { %1115 = vmatpush1.bf16.msra.mxu0 %v2221_v3 }
  0x80   :  { %1125 = vmatprep.subr.bf16.mxu0 %v2228_v4 }
  0x82   :  { %1117 = vmatmul.mubr.bf16.vlgmr.msra.gmra.mrb[0].mxu0 %v2626_v25 }
  0x83   :  { %1126 = vmatpush1.bf16.msra.mxu0 %v2226_v5  ;;  %1157 = vmatprep.mubr.bf16.mxu0 %v40_v45 }
  0x84   :  { %1127 = vmatprep.subr.bf16.mxu0 %v2233_v6 }
  0x87   :  { %1128 = vmatpush1.bf16.msra.mxu0 %v2231_v7 }
  0x88   :  { %12 = vsyncpa [#allocation3], 0  ;;  %1129 = vmatprep.subr.bf16.mxu0 %v2237_v16  ;;  %v2240_v9 = vld [vmem:[%s2970_s1 + $0x34c] ss:$12 sps:$4 sm:$0xff]   ;;  %v2238_v10 = vld [vmem:[%s2970_s1 + $0x348] ss:$12 sps:$4 sm:$0xff]   ;;  %v240_v58 = vlaneseq }
  0x89   :  { %v2244_v11 = vld [vmem:[%s2970_s1 + $0x364] ss:$12 sps:$4 sm:$0xff]   ;;  %v2242_v12 = vld [vmem:[%s2970_s1 + $0x360] ss:$12 sps:$4 sm:$0xff]   ;;  %v2247_v13 = vld [vmem:[%s2970_s1 + $0x37c] ss:$12 sps:$4 sm:$0xff]  }
  0x8a   :  { %v2245_v14 = vld [vmem:[%s2970_s1 + $0x378] ss:$12 sps:$4 sm:$0xff]   ;;  %v2250_v15 = vld [vmem:[%s2970_s1 + $0x394] ss:$12 sps:$4 sm:$0xff]   ;;  %v2248_v17 = vld [vmem:[%s2970_s1 + $0x390] ss:$12 sps:$4 sm:$0xff]  }
  0x8b   :  { %1130 = vmatpush1.bf16.msra.mxu0 %v2235_v8  ;;  %v2253_v18 = vld [vmem:[%s2970_s1 + $0x3ac] ss:$12 sps:$4 sm:$0xff]   ;;  %v2251_v19 = vld [vmem:[%s2970_s1 + $0x3a8] ss:$12 sps:$4 sm:$0xff]   ;;  %v2256_v20 = vld [vmem:[%s2970_s1 + $0x3c4] ss:$12 sps:$4 sm:$0xff]  }
  0x8c   :  { %1131 = vmatprep.subr.bf16.mxu0 %v2240_v9  ;;  %v2254_v21 = vld [vmem:[%s2970_s1 + $0x3c0] ss:$12 sps:$4 sm:$0xff]   ;;  %v2259_v22 = vld [vmem:[%s2970_s1 + $0x3dc] ss:$12 sps:$4 sm:$0xff]   ;;  %v2257_v23 = vld [vmem:[%s2970_s1 + $0x3d8] ss:$12 sps:$4 sm:$0xff]  }
  0x8d   :  { %v2262_v24 = vld [vmem:[%s2970_s1 + $0x3f4] ss:$12 sps:$4 sm:$0xff]   ;;  %v2260_v25 = vld [vmem:[%s2970_s1 + $0x3f0] ss:$12 sps:$4 sm:$0xff]   ;;  %v2265_v26 = vld [vmem:[%s2970_s1 + $0x40c] ss:$12 sps:$4 sm:$0xff]  }
  0x8e   :  { %v2263_v27 = vld [vmem:[%s2970_s1 + $0x408] ss:$12 sps:$4 sm:$0xff]   ;;  %v2268_v28 = vld [vmem:[%s2970_s1 + $0x424] ss:$12 sps:$4 sm:$0xff]   ;;  %v2266_v29 = vld [vmem:[%s2970_s1 + $0x420] ss:$12 sps:$4 sm:$0xff]  }
  0x8f   :  { %1132 = vmatpush1.bf16.msra.mxu0 %v2238_v10  ;;  %v2271_v30 = vld [vmem:[%s2970_s1 + $0x43c] ss:$12 sps:$4 sm:$0xff]   ;;  %v2269_v31 = vld [vmem:[%s2970_s1 + $0x438] ss:$12 sps:$4 sm:$0xff]   ;;  %v2274_v32 = vld [vmem:[%s2970_s1 + $0x454] ss:$12 sps:$4 sm:$0xff]  }
  0x90   :  { %1133 = vmatprep.subr.bf16.mxu0 %v2244_v11  ;;  %v2272_v33 = vld [vmem:[%s2970_s1 + $0x450] ss:$12 sps:$4 sm:$0xff]   ;;  %v2277_v34 = vld [vmem:[%s2970_s1 + $0x46c] ss:$12 sps:$4 sm:$0xff]   ;;  %v2275_v35 = vld [vmem:[%s2970_s1 + $0x468] ss:$12 sps:$4 sm:$0xff]  }
  0x91   :  { %v2278_v36 = vld [vmem:[%s2972_s3 + $0x40] sm:$0xff]   ;;  %v2280_v38 = vld [vmem:[%s2972_s3 + $0x48] sm:$0xff]   ;;  %v2282_v40 = vld [vmem:[%s2972_s3 + $0x50] sm:$0xff]   ;;  %v241_v61 = vshrl.u32 %v240_v58, 7  ;;  %vm1535_vm2 = vcmask 1045504   ;;  %vm1531_vm3 = vcmask 359424  }
  0x92   :  { %v2279_v37 = vld [vmem:[%s2972_s3] sm:$0xff]   ;;  %1995 = vmatprep.subr.bf16.mxu1 %v2278_v36  ;;  %v2281_v39 = vld [vmem:[%s2972_s3 + $0x8] sm:$0xff]   ;;  %v2283_v41 = vld [vmem:[%s2972_s3 + $0x10] sm:$0xff]   ;;  %s2332_s1 = smov [#allocation2]  }
  0x93   :  { %1134 = vmatpush1.bf16.msra.mxu0 %v2242_v12  ;;  %1996 = vmatpush3.bf16.msra.mxu1 %v2279_v37  ;;  %v2284_v42 = vld [vmem:[%s2972_s3 + $0x58] sm:$0xff]   ;;  %v2286_v44 = vld [vmem:[%s2972_s3 + $0x60] sm:$0xff]   ;;  %v2288_v46 = vld [vmem:[%s2972_s3 + $0x68] sm:$0xff]   ;;  %v250_v0 = vsub.s32 2, %v241_v61  ;;  %s1740_s13 = sshll.u32 %s2332_s1, 4  ;;  %s1741_s13 = int_to_ptr.vmem [resolvable:$true] %s1740_s13 }
  0x94   :  { %1135 = vmatprep.subr.bf16.mxu0 %v2247_v13  ;;  %1997 = vmatprep.subr.bf16.mxu1 %v2280_v38  ;;  %v2285_v43 = vld [vmem:[%s2972_s3 + $0x18] sm:$0xff]   ;;  %v2287_v45 = vld [vmem:[%s2972_s3 + $0x20] sm:$0xff]   ;;  %v2289_v48 = vld [vmem:[%s2972_s3 + $0x28] sm:$0xff]   ;;  %p2310_p1 = scmp.lt.s32.totalorder %s1741_s13, %s1741_s13 }
  0x95   :  { %v2290_v57 = vld [vmem:[%s2972_s3 + $0x70] sm:$0xff]   ;;  %v2292_v60 = vld [vmem:[%s2972_s3 + $0x78] sm:$0xff]   ;;  %v238_v1 = vld [vmem:[%s2971_s2] sm:$0x7] }
  0x96   :  { %v2293_v63 = vld [vmem:[%s2972_s3 + $0x38] sm:$0xff]   ;;  %v251_v2 = vrot.slane %v238_v1, %v250_v0  ;;  %v2294_v36 = vld [vmem:[%s2972_s3 + $0x80] sm:$0xff]   ;;  %v2295_v38 = vld [vmem:[%s2972_s3 + $0x88] sm:$0xff]  }
  0x97   :  { %1136 = vmatpush1.bf16.msra.mxu0 %v2245_v14  ;;  %1998 = vmatpush3.bf16.msra.mxu1 %v2281_v39  ;;  %v2296_v39 = vld [vmem:[%s2972_s3 + $0x90] sm:$0x3f]  }
  0x98   :  { %1137 = vmatprep.subr.bf16.mxu0 %v2250_v15  ;;  %1999 = vmatprep.subr.bf16.mxu1 %v2282_v40 }
  0x9b   :  { %1138 = vmatpush1.bf16.msra.mxu0 %v2248_v17  ;;  %2000 = vmatpush3.bf16.msra.mxu1 %v2283_v41  ;;  %v1537_v41 = vsel %vm1535_vm2, %v2296_v39, 0 }
  0x9c   :  { %1139 = vmatprep.subr.bf16.mxu0 %v2253_v18  ;;  %2001 = vmatprep.subr.bf16.mxu1 %v2284_v42  ;;  %v2297_v42 = vld [vmem:[%s2974_s5] sm:$0xff]  }
  0x9f   :  { %1140 = vmatpush1.bf16.msra.mxu0 %v2251_v19  ;;  %2002 = vmatpush3.bf16.msra.mxu1 %v2285_v43 }
  0xa0   :  { %1141 = vmatprep.subr.bf16.mxu0 %v2256_v20  ;;  %2003 = vmatprep.subr.bf16.mxu1 %v2286_v44  ;;  %v2298_v44 = vld [vmem:[%s2974_s5 + $0x8] sm:$0xff]  }
  0xa3   :  { %1142 = vmatpush1.bf16.msra.mxu0 %v2254_v21  ;;  %2004 = vmatpush3.bf16.msra.mxu1 %v2287_v45  ;;  %v242_v21 = vsub.s32 0, %v241_v61  ;;  %v2299_v45 = vld [vmem:[%s2974_s5 + $0x10] sm:$0xff]  }
  0xa4   :  { %1143 = vmatprep.subr.bf16.mxu0 %v2259_v22  ;;  %2005 = vmatprep.subr.bf16.mxu1 %v2288_v46  ;;  %v246_v22 = vsub.s32 1, %v241_v61  ;;  %v2300_v46 = vld [vmem:[%s2974_s5 + $0x18] sm:$0xff]  }
  0xa7   :  { %1144 = vmatpush1.bf16.msra.mxu0 %v2257_v23  ;;  %2006 = vmatpush3.bf16.msra.mxu1 %v2289_v48  ;;  %v243_v23 = vrot.slane %v238_v1, %v242_v21  ;;  %v2302_v48 = vld [vmem:[%s2974_s5 + $0x28] sm:$0xff]  }
  0xa8   :  { %1145 = vmatprep.subr.bf16.mxu0 %v2262_v24  ;;  %2007 = vmatprep.subr.bf16.mxu1 %v2290_v57  ;;  %v247_v24 = vrot.slane %v238_v1, %v246_v22  ;;  %v1918_v1 = vld [vmem:[%s2975_s6] ss:$0 sm:$0xff] }
  0xab   :  { %1146 = vmatpush1.bf16.msra.mxu0 %v2260_v25 }
  0xac   :  { %1147 = vmatprep.subr.bf16.mxu0 %v2265_v26 }
  0xaf   :  { %1148 = vmatpush1.bf16.msra.mxu0 %v2263_v27 }
  0xb0   :  { %1149 = vmatprep.subr.bf16.mxu0 %v2268_v28 }
  0xb3   :  { %1150 = vmatpush1.bf16.msra.mxu0 %v2266_v29 }
  0xb4   :  { %1151 = vmatprep.subr.bf16.mxu0 %v2271_v30 }
  0xb7   :  { %1152 = vmatpush1.bf16.msra.mxu0 %v2269_v31 }
  0xb8   :  { %1153 = vmatprep.subr.bf16.mxu0 %v2274_v32 }
  0xbb   :  { %1154 = vmatpush1.bf16.msra.mxu0 %v2272_v33 }
  0xbc   :  { %1155 = vmatprep.subr.bf16.mxu0 %v2277_v34 }
  0xbf   :  { %1156 = vmatpush1.bf16.msra.mxu0 %v2275_v35 }
  0xc2   :  { %1158 = vmatmul.mubr.bf16.vlgmr.msra.gmra.mrb[0].mxu0 %v2725_v59  ;;  %v2291_v59 = vld [vmem:[%s2972_s3 + $0x30] sm:$0xff]  }
  0xc3   :  { %2008 = vmatpush3.bf16.msra.mxu1 %v2291_v59 }
  0xc4   :  { %2009 = vmatprep.subr.bf16.mxu1 %v2292_v60 }
  0xc7   :  { %2010 = vmatpush3.bf16.msra.mxu1 %v2293_v63 }
  0xc8   :  { %2036 = vmatprep.subr.bf16.mxu1 %v2330_v62 }
  0xdc   :  { %v1200_v47 = vpop.f32.mrb[0].mxu1 }
  0xdd   :  { %v1202_v49 = vpop.f32.mrb[1].mxu1 }
  0xde   :  { %v1204_v50 = vpop.f32.mrb[2].mxu1 }
  0xdf   :  { %v1205_v51 = vpop.f32.mrb[3].mxu1  ;;  %v2304_v50 = vld [vmem:[%s2974_s5 + $0x38] sm:$0xff]  }
  0xfc   :  { %v1943_v52 = vpop.f32.mrb[4].mxu1 }
  0xfd   :  { %v1944_v53 = vpop.f32.mrb[5].mxu1 }
  0xfe   :  { %v1945_v54 = vadd.f32 %v1944_v53, %v1943_v52  ;;  %v1946_v55 = vpop.f32.mrb[6].mxu1 }
  0xff   :  { %v1947_v56 = vpop.f32.mrb[7].mxu1 }
 0x100   :  { %v1242_v3 = vadd.f32 %v1945_v54, %v251_v2  ;;  %v1897_v56 = vld [vmem:[%s2973_s4] ss:$0 sm:$0xff]  ;;  %s2305_s4 = scalar_lea.vmem %s1741_s13, 64 }
 0x101   :  { %p2306_p0 = scmp.ne.s32.totalorder %s1741_s13, %s2305_s4  ;;  %p2311_p2 = scmp.lt.s32.totalorder %s2305_s4, %s2305_s4 }
 0x103   :  { %p2312_p3 = por %p2311_p2, %p2310_p1 }
 0x105   :  { %p2313_p4 = pnand %p2312_p3, %p2306_p0 }
 0x11c   :  { %v1965_v4 = vpop.f32.mrb[8].mxu1 }
 0x11d   :  { %v1966_v5 = vpop.f32.mrb[9].mxu1 }
 0x11e   :  { %v1967_v6 = vadd.f32 %v1966_v5, %v1965_v4  ;;  %v1968_v7 = vpop.f32.mrb[10].mxu1 }
 0x11f   :  { %v1969_v16 = vpop.f32.mrb[11].mxu1 }
 0x120   :  { %v1282_v8 = vadd.f32 %v1967_v6, %v1242_v3 }
 0x13c   :  { %v1987_v9 = vpop.f32.mrb[12].mxu1 }
 0x13d   :  { %v1988_v10 = vpop.f32.mrb[13].mxu1 }
 0x13e   :  { %v1989_v11 = vadd.f32 %v1988_v10, %v1987_v9  ;;  %v1990_v12 = vpop.f32.mrb[14].mxu1 }
 0x13f   :  { %v1991_v13 = vpop.f32.mrb[15].mxu1 }
 0x140   :  { %v1322_v14 = vadd.f32 %v1989_v11, %v1282_v8 }
 0x144   :  { %v1361_v15 = vpop.f32.mrb[16].mxu1 }
 0x145   :  { %v1362_v17 = vadd.f32 %v1361_v15, %v1322_v14  ;;  %v2034_v18 = vpop.f32.mrb[17].mxu1 }
 0x146   :  { %v1364_v19 = vpop.f32.mrb[18].mxu1 }
 0x147   :  { %v2035_v20 = vpop.f32.mrb[19].mxu1  ;;  %v1369_v40 = vmax.f32 %v1362_v17, 0.0 }
 0x149   :  { %v1372_v43 = vpack.c.bf16 %v1369_v40, %v1369_v40 }
 0x195   :  { %v1159_v25 = vpop.f32.mrb[0].mxu0 }
 0x196   :  { %v2066_v26 = vadd.f32 %v1159_v25, %v243_v23  ;;  %v1161_v27 = vpop.f32.mrb[1].mxu0 }
 0x197   :  { %v2068_v28 = vadd.f32 %v1161_v27, %v247_v24  ;;  %v1163_v29 = vpop.f32.mrb[2].mxu0 }
 0x198   :  { %v2067_v30 = vadd.f32 %v2066_v26, %v1200_v47  ;;  %v1164_v31 = vpop.f32.mrb[3].mxu0  ;;  %v2301_v47 = vld [vmem:[%s2974_s5 + $0x20] sm:$0xff]  }
 0x199   :  { %v2069_v32 = vadd.f32 %v2068_v28, %v1202_v49  ;;  %v2303_v49 = vld [vmem:[%s2974_s5 + $0x30] sm:$0xff]  }
 0x19a   :  { %v1367_v33 = vmax.f32 %v2067_v30, 0.0 }
 0x19b   :  { %v1368_v34 = vmax.f32 %v2069_v32, 0.0 }
 0x19c   :  { %v1370_v37 = vpack.c.bf16 %v1367_v33, %v1367_v33 }
 0x19d   :  { %v1371_v35 = vpack.c.bf16 %v1368_v34, %v1368_v34 }
 0x19f   :  { %1571 = vmatprep.mubr.bf16.mxu1 %v1371_v35 }
 0x1a0   :  { %1572 = vmatmul.mubr.bf16.vlgmr.msra.gmra.mrb[20].mxu1 %v1370_v37 }
 0x1a1   :  { %2037 = vmatpush3.bf16.msra.mxu1 %v2294_v36  ;;  %2042 = vmatprep.mubr.msk.bf16.mxu1 %vm2331_vm1, %v2330_v62 }
 0x1a2   :  { %2038 = vmatprep.subr.bf16.mxu1 %v2330_v62 }
 0x1a5   :  { %2039 = vmatpush3.bf16.msra.mxu1 %v2295_v38 }
 0x1a6   :  { %2040 = vmatprep.subr.bf16.mxu1 %v2330_v62 }
 0x1a9   :  { %2041 = vmatpush3.bf16.msra.mxu1 %v1537_v41 }
 0x1aa   :  { %2046 = vmatprep.subr.bf16.mxu1 %v2330_v62 }
 0x1ac   :  { %2043 = vmatmul.mubr.msk.bf16.vlgmr.msra.gmra.mrb[24].mxu1 %vm1531_vm3, %v1372_v43 }
 0x1ad   :  { %2047 = vmatpush3.bf16.msra.mxu1 %v2297_v42  ;;  %2062 = vmatprep.mubr.msk.bf16.mxu1 %vm2331_vm1, %v2330_v62 }
 0x1ae   :  { %2048 = vmatprep.subr.bf16.mxu1 %v2330_v62 }
 0x1b1   :  { %2049 = vmatpush3.bf16.msra.mxu1 %v2298_v44 }
 0x1b2   :  { %2050 = vmatprep.subr.bf16.mxu1 %v2330_v62 }
 0x1b5   :  { %2051 = vmatpush3.bf16.msra.mxu1 %v2299_v45 }
 0x1b6   :  { %2052 = vmatprep.subr.bf16.mxu1 %v2330_v62 }
 0x1b9   :  { %2053 = vmatpush3.bf16.msra.mxu1 %v2300_v46 }
 0x1ba   :  { %2054 = vmatprep.subr.bf16.mxu1 %v2330_v62 }
 0x1bd   :  { %2055 = vmatpush3.bf16.msra.mxu1 %v2301_v47 }
 0x1be   :  { %2056 = vmatprep.subr.bf16.mxu1 %v2330_v62 }
 0x1c1   :  { %2057 = vmatpush3.bf16.msra.mxu1 %v2302_v48 }
 0x1c2   :  { %2058 = vmatprep.subr.bf16.mxu1 %v2330_v62 }
 0x1c5   :  { %2059 = vmatpush3.bf16.msra.mxu1 %v2303_v49 }
 0x1c6   :  { %2060 = vmatprep.subr.bf16.mxu1 %v2330_v62 }
 0x1c9   :  { %2061 = vmatpush3.bf16.msra.mxu1 %v2304_v50 }
 0x273   :  { %v2011_v51 = vpop.f32.mrb[20].mxu1 }
 0x274   :  { %v2012_v52 = vpop.f32.mrb[21].mxu1 }
 0x275   :  { %v2013_v53 = vadd.f32 %v2012_v52, %v2011_v51  ;;  %v2014_v54 = vpop.f32.mrb[22].mxu1 }
 0x276   :  { %v2015_v55 = vpop.f32.mrb[23].mxu1 }
 0x277   :  { %v1574_v57 = vadd.f32 %v2013_v53, %v1897_v56 }
 0x27f   :  { %v1613_v58 = vpop.f32.mrb[24].mxu1 }
 0x280   :  { %v1614_v59 = vadd.f32 %v1613_v58, %v1574_v57  ;;  %v2044_v60 = vpop.f32.mrb[25].mxu1 }
 0x281   :  { %v1616_v61 = vpop.f32.mrb[26].mxu1 }
 0x282   :  { %v1619_v62 = vmax.f32 %v1614_v59, 0.0  ;;  %v2045_v63 = vpop.f32.mrb[27].mxu1 }
 0x284   :  { %v1620_v0 = vpack.c.bf16 %v1619_v62, %v1619_v62 }
 0x286   :  { %2063 = vmatmul.mubr.bf16.vlgmr.msra.gmra.mrb[28].mxu1 %v1620_v0 }
 0x359   :  { %v1726_v2 = vpop.f32.mrb[28].mxu1 }
 0x35a   :  { %v1727_v3 = vadd.f32 %v1918_v1, %v1726_v2  ;;  %v2064_v4 = vpop.f32.mrb[29].mxu1 }
 0x35b   :  { %v1729_v5 = vpop.f32.mrb[30].mxu1 }
 0x35c   :  { %v1732_v6 = vpack.c.bf16 %v1727_v3, %v1727_v3  ;;  %v2065_v7 = vpop.f32.mrb[31].mxu1 }
 0x35e   :  { %1733 = vst [vmem:[#allocation2] sm:$0xf] %v1732_v6 }
 0x35f   :  { %2316 = shalt.err (!%p2313_p4)
}
 0x360   :  { %s2317_s6 = scalar_lea.hbm %s2976_s7, 64 }
 0x361   :  { %p2318_p5 = scmp.ne.s32.totalorder %s2976_s7, %s2317_s6  ;;  %p2321_p6 = scmp.lt.u32.totalorder %s2317_s6, %s2976_s7 }
 0x363   :  { %p2323_p7 = pnand %p2321_p6, %p2318_p5 }
 0x365   :  { %2326 = shalt.err (!%p2323_p7)
}
 0x366   :  { %1743 = dma.vmem_to_hbm [thread:$0]  %s1741_s13, 64, %s2976_s7, [#allocation3]  }
 0x367   :  { %2327 = dma.done.wait [#allocation3], 64  }
 0x368   :  { %2328 = vsyncadd [#allocation3], 4294967232 }
 0x369   :  { %1747 = vsyncpa [#allocation3], 1 }

</bundles_post_ra>
